<compile_context>
chip_gen: v5e
topology: v5e:2x2
jax: 0.10.0
libtpu: 0.0.40
codegen_flags: <defaults>
</compile_context>

<pallas_src>
import numpy as np

import jax
import jax.numpy as jnp
from jax import lax
from jax.experimental import pallas as pl
from jax.experimental.pallas import tpu as pltpu


N_NODES = 16        # must be >= 15: NodeEmbeddingModule reads h_v[14]
TARGET_NODE = 14    # hard-coded in the PyTorch module
OUT_LANES = 128     # lane-dense output slab width


def _attention_gnn_layer(h, mask, att_wt, att_q_row, w_self, w_nbr, b):
    """One NodeEmbeddingModule layer: neighbor attention + relu(Linear([h, hN]))."""
    n = h.shape[0]
    # Per-node attention logit z_u = q^T relu(W h_u); it does not depend on the
    # center node v, so compute it once for all nodes.
    u = jnp.maximum(jnp.dot(h, att_wt, preferred_element_type=jnp.float32), 0.0)   # (N, Hd)
    # (1, Hd) . (N, Hd)^T -> (1, N): logits as a lane-major row (no in-kernel transpose).
    z_row = lax.dot_general(att_q_row, u, (((1,), (1,)), ((), ())),
                            preferred_element_type=jnp.float32)                    # (1, N)
    # Masked softmax over neighbors (axis 1).  Rows with no neighbors produce
    # all-zero weights, matching torch.zeros_like(h_v[v]) in the reference.
    neg = jnp.float32(-1e30)
    masked = jnp.where(mask, jnp.broadcast_to(z_row, (n, n)), neg)                  # (N, N)
    m = jnp.max(masked, axis=1, keepdims=True)                                      # (N, 1)
    e = jnp.where(mask, jnp.exp(masked - m), 0.0)                                   # (N, N)
    denom = jnp.sum(e, axis=1, keepdims=True)                                       # (N, 1)
    safe = jnp.where(denom > 0.0, denom, 1.0)
    attn = e * pl.reciprocal(safe, approx=True)          # EUP reciprocal (perf feedback)
    h_nbr = jnp.dot(attn, h, preferred_element_type=jnp.float32)                    # (N, D)
    # relu(Linear(concat([h, hN], dim=1))): weight pre-split on the host into the half
    # acting on h (w_self) and the half acting on hN (w_nbr) -> two matmuls, no concat.
    out = (jnp.dot(h, w_self, preferred_element_type=jnp.float32)
           + jnp.dot(h_nbr, w_nbr, preferred_element_type=jnp.float32)
           + b)
    return jnp.maximum(out, 0.0)


def ilgr_kernel(x_ref, adj_ref,
                a0_wt_ref, a0_q_ref, l0_ws_ref, l0_wn_ref, l0_b_ref,
                a1_wt_ref, a1_q_ref, l1_ws_ref, l1_wn_ref, l1_b_ref,
                out_wt_ref, out_b_ref,
                fc1_wt_ref, fc1_b_ref, fc2_wt_ref, fc2_b_ref,
                fc3_w_ref, fc3_b_ref,
                o_ref):
    h = x_ref[0]                    # (N, D0)       current graph's node features
    mask = adj_ref[0] > 0.0         # (N, N)        adj[v, u] = 1 iff u in neighbors(v)

    # NodeEmbeddingModule: two attention + Linear layers.
    h = _attention_gnn_layer(h, mask, a0_wt_ref[...], a0_q_ref[...],
                             l0_ws_ref[...], l0_wn_ref[...], l0_b_ref[...])
    h = _attention_gnn_layer(h, mask, a1_wt_ref[...], a1_q_ref[...],
                             l1_ws_ref[...], l1_wn_ref[...], l1_b_ref[...])

    # h_v[14]: select node 14 with a one-hot matmul (avoids an unaligned sublane slice).
    row_ids = lax.broadcasted_iota(jnp.int32, (1, N_NODES), 1)
    onehot = (row_ids == TARGET_NODE).astype(jnp.float32)                            # (1, N)
    node = jnp.dot(onehot, h, preferred_element_type=jnp.float32)                    # (1, H_last)

    # output_layer + RegressionModule: fc1 -> relu -> fc2 -> relu -> fc3.
    emb = jnp.dot(node, out_wt_ref[...], preferred_element_type=jnp.float32) + out_b_ref[...]
    r = jnp.maximum(jnp.dot(emb, fc1_wt_ref[...], preferred_element_type=jnp.float32)
                    + fc1_b_ref[...], 0.0)
    r = jnp.maximum(jnp.dot(r, fc2_wt_ref[...], preferred_element_type=jnp.float32)
                    + fc2_b_ref[...], 0.0)
    # fc3 has a single output: multiply + lane reduction (no degenerate (K=2, N=1) matmul).
    score = jnp.sum(r * fc3_w_ref[...], axis=1, keepdims=True) + fc3_b_ref[...]      # (1, 1)

    # Lane-dense 128-wide store (perf feedback); the wrapper reads lane 0.
    o_ref[0] = jnp.broadcast_to(score, (1, OUT_LANES))


_PARAM_ORDER = ("a0_wt", "a0_q", "l0_ws", "l0_wn", "l0_b",
                "a1_wt", "a1_q", "l1_ws", "l1_wn", "l1_b",
                "out_wt", "out_b",
                "fc1_wt", "fc1_b", "fc2_wt", "fc2_b",
                "fc3_w", "fc3_b")


def ilgr_forward(x, adj, params):
    """x: (B, N, D0) node features; adj: (B, N, N) 0/1 adjacency. Returns (B,) scores."""
    B = x.shape[0]
    weights = tuple(params[k] for k in _PARAM_ORDER)

    def per_graph_spec(shape):
        return pl.BlockSpec((1,) + tuple(shape[1:]),
                            lambda b, nd=len(shape): (b,) + (0,) * (nd - 1))

    def resident_spec(shape):
        # Full array with a constant block index -> fetched once, stays VMEM-resident
        # across the whole batch grid.
        return pl.BlockSpec(tuple(shape), lambda b, nd=len(shape): (0,) * nd)

    in_specs = ([per_graph_spec(x.shape), per_graph_spec(adj.shape)]
                + [resident_spec(w.shape) for w in weights])
    out_specs = pl.BlockSpec((1, 1, OUT_LANES), lambda b: (b, 0, 0))

    out = pl.pallas_call(
        ilgr_kernel,
        out_shape=jax.ShapeDtypeStruct((B, 1, OUT_LANES), jnp.float32),
        grid=(B,),
        in_specs=in_specs,
        out_specs=out_specs,
        compiler_params=pltpu.CompilerParams(
            dimension_semantics=("parallel",)),   # independent graphs; v7x uses both TCs
    )(x, adj, *weights)
    return out[:, 0, 0]


def _reference_single(x, adj, p):
    """Literal numpy re-implementation of ILGRModel.forward for one graph."""
    h = np.asarray(x, np.float32)
    adj = np.asarray(adj, np.float32)
    layers = [("a0_wt", "a0_q", "l0_ws", "l0_wn", "l0_b"),
              ("a1_wt", "a1_q", "l1_ws", "l1_wn", "l1_b")]
    for wk, qk, sk, nk, bk in layers:
        att_wt, att_q = p[wk], p[qk]
        w_self, w_nbr, b = p[sk], p[nk], p[bk]
        rows = []
        for v in range(h.shape[0]):
            nbrs = np.nonzero(adj[v] > 0.0)[0]
            if nbrs.size == 0:
                rows.append(np.zeros_like(h[v]))
            else:
                ne = h[nbrs]                                              # (k, D)
                scores = np.maximum(ne @ att_wt, 0.0) @ att_q.T           # (k, 1)
                scores = scores - scores.max()
                w = np.exp(scores)
                w = w / w.sum()                                           # softmax over dim 0
                rows.append((w * ne).sum(axis=0))                         # (D,)
        h_nbr = np.stack(rows, axis=0)
        h = np.maximum(h @ w_self + h_nbr @ w_nbr + b, 0.0)
    emb = h[TARGET_NODE:TARGET_NODE + 1] @ p["out_wt"] + p["out_b"]
    r = np.maximum(emb @ p["fc1_wt"] + p["fc1_b"], 0.0)
    r = np.maximum(r @ p["fc2_wt"] + p["fc2_b"], 0.0)
    score = (r * p["fc3_w"]).sum(axis=1, keepdims=True) + p["fc3_b"]
    return float(score[0, 0])


if __name__ == "__main__":
    # Small instantiation consistent with the module's shape constraints
    # (hidden_dim == input_dim // 2, num_layers = 2):
    #   input_dim = 32, hidden_dim = 16, output_dim = 20, N = 16 nodes, B = 4 graphs.
    B, N, D0 = 4, N_NODES, 32
    H0, H1 = 16, 8                  # hidden_dim // 2**l for l = 0, 1
    OUT_DIM, R1, R2 = 20, 10, 2     # output_dim, output_dim//2, (output_dim//2)//5

    key = jax.random.PRNGKey(0)
    kx, ka, *wkeys = jax.random.split(key, 2 + len(_PARAM_ORDER))

    x = jax.random.normal(kx, (B, N, D0), jnp.float32)
    # Random graphs: dense 0/1 adjacency, no self-loops; node 3's row is cleared in
    # every graph to exercise the "no neighbors -> zeros" branch.
    adj = (jax.random.uniform(ka, (B, N, N)) < 0.35).astype(jnp.float32)
    adj = adj * (1.0 - jnp.eye(N, dtype=jnp.float32))[None]
    adj = adj.at[:, 3, :].set(0.0)

    def _w(k, shape, scale=0.3):
        return scale * jax.random.normal(k, shape, jnp.float32)

    def _b(k, shape):
        return jax.random.uniform(k, shape, jnp.float32, 0.05, 0.15)

    shapes = {
        # layer 0: AttentionLayer(32, 16) (W passed transposed, q as (1, Hd)) and
        # Linear(64, 16) with its weight^T split into self / neighbor halves.
        "a0_wt": (D0, H0), "a0_q": (1, H0),
        "l0_ws": (D0, H0), "l0_wn": (D0, H0), "l0_b": (1, H0),
        # layer 1: AttentionLayer(16, 8) and Linear(32, 8).
        "a1_wt": (H0, H1), "a1_q": (1, H1),
        "l1_ws": (H0, H1), "l1_wn": (H0, H1), "l1_b": (1, H1),
        # output_layer: Linear(8, 20) (weight^T).
        "out_wt": (H1, OUT_DIM), "out_b": (1, OUT_DIM),
        # RegressionModule(20, 10, 1): fc1(20->10), fc2(10->2), fc3(2->1).
        "fc1_wt": (OUT_DIM, R1), "fc1_b": (1, R1),
        "fc2_wt": (R1, R2), "fc2_b": (1, R2),
        "fc3_w": (1, R2), "fc3_b": (1, 1),
    }
    params = {}
    for name, kk in zip(_PARAM_ORDER, wkeys):
        shape = shapes[name]
        params[name] = _b(kk, shape) if name.endswith("_b") else _w(kk, shape)

    out = jax.block_until_ready(ilgr_forward(x, adj, params))
    assert out.shape == (B,)

    params_np = {k: np.asarray(v) for k, v in params.items()}
    for g in range(B):
        ref = _reference_single(np.asarray(x[g]), np.asarray(adj[g]), params_np)
        got = float(out[g])
        assert abs(got - ref) <= 5e-3 + 5e-3 * abs(ref), (g, got, ref)

    print("KERNEL_OK")
</pallas_src>

<mosaic_0001>
module attributes {stable_mosaic.version = 11 : i64} {
  func.func @ilgr_kernel(%arg0: i32, %arg1: memref<1x16x32xf32, #tpu.memory_space<vmem>>, %arg2: memref<1x16x16xf32, #tpu.memory_space<vmem>>, %arg3: memref<32x16xf32, #tpu.memory_space<vmem>>, %arg4: memref<1x16xf32, #tpu.memory_space<vmem>>, %arg5: memref<32x16xf32, #tpu.memory_space<vmem>>, %arg6: memref<32x16xf32, #tpu.memory_space<vmem>>, %arg7: memref<1x16xf32, #tpu.memory_space<vmem>>, %arg8: memref<16x8xf32, #tpu.memory_space<vmem>>, %arg9: memref<1x8xf32, #tpu.memory_space<vmem>>, %arg10: memref<16x8xf32, #tpu.memory_space<vmem>>, %arg11: memref<16x8xf32, #tpu.memory_space<vmem>>, %arg12: memref<1x8xf32, #tpu.memory_space<vmem>>, %arg13: memref<8x20xf32, #tpu.memory_space<vmem>>, %arg14: memref<1x20xf32, #tpu.memory_space<vmem>>, %arg15: memref<20x10xf32, #tpu.memory_space<vmem>>, %arg16: memref<1x10xf32, #tpu.memory_space<vmem>>, %arg17: memref<10x2xf32, #tpu.memory_space<vmem>>, %arg18: memref<1x2xf32, #tpu.memory_space<vmem>>, %arg19: memref<1x2xf32, #tpu.memory_space<vmem>>, %arg20: memref<1x1xf32, #tpu.memory_space<vmem>>, %arg21: memref<1x1x128xf32, #tpu.memory_space<vmem>>) attributes {dimension_semantics = [#tpu.dimension_semantics<parallel>], iteration_bounds = array<i64: 4>, scalar_prefetch = 0 : i64, scratch_operands = 0 : i64, tpu.core_type = #tpu.core_type<tc>, window_params = [{transform_indices = @transform_0, window_bounds = array<i64: 1, 16, 32>}, {transform_indices = @transform_1, window_bounds = array<i64: 1, 16, 16>}, {pipeline_mode = #tpu.pipeline_mode<synchronous>, transform_indices = @transform_2, window_bounds = array<i64: 32, 16>}, {pipeline_mode = #tpu.pipeline_mode<synchronous>, transform_indices = @transform_3, window_bounds = array<i64: 1, 16>}, {pipeline_mode = #tpu.pipeline_mode<synchronous>, transform_indices = @transform_4, window_bounds = array<i64: 32, 16>}, {pipeline_mode = #tpu.pipeline_mode<synchronous>, transform_indices = @transform_5, window_bounds = array<i64: 32, 16>}, {pipeline_mode = #tpu.pipeline_mode<synchronous>, transform_indices = @transform_6, window_bounds = array<i64: 1, 16>}, {pipeline_mode = #tpu.pipeline_mode<synchronous>, transform_indices = @transform_7, window_bounds = array<i64: 16, 8>}, {pipeline_mode = #tpu.pipeline_mode<synchronous>, transform_indices = @transform_8, window_bounds = array<i64: 1, 8>}, {pipeline_mode = #tpu.pipeline_mode<synchronous>, transform_indices = @transform_9, window_bounds = array<i64: 16, 8>}, {pipeline_mode = #tpu.pipeline_mode<synchronous>, transform_indices = @transform_10, window_bounds = array<i64: 16, 8>}, {pipeline_mode = #tpu.pipeline_mode<synchronous>, transform_indices = @transform_11, window_bounds = array<i64: 1, 8>}, {pipeline_mode = #tpu.pipeline_mode<synchronous>, transform_indices = @transform_12, window_bounds = array<i64: 8, 20>}, {pipeline_mode = #tpu.pipeline_mode<synchronous>, transform_indices = @transform_13, window_bounds = array<i64: 1, 20>}, {pipeline_mode = #tpu.pipeline_mode<synchronous>, transform_indices = @transform_14, window_bounds = array<i64: 20, 10>}, {pipeline_mode = #tpu.pipeline_mode<synchronous>, transform_indices = @transform_15, window_bounds = array<i64: 1, 10>}, {pipeline_mode = #tpu.pipeline_mode<synchronous>, transform_indices = @transform_16, window_bounds = array<i64: 10, 2>}, {pipeline_mode = #tpu.pipeline_mode<synchronous>, transform_indices = @transform_17, window_bounds = array<i64: 1, 2>}, {pipeline_mode = #tpu.pipeline_mode<synchronous>, transform_indices = @transform_18, window_bounds = array<i64: 1, 2>}, {pipeline_mode = #tpu.pipeline_mode<synchronous>, transform_indices = @transform_19, window_bounds = array<i64: 1, 1>}, {transform_indices = @transform_20, window_bounds = array<i64: 1, 1, 128>}]} {
    %c0 = arith.constant 0 : index
    %c0_0 = arith.constant 0 : index
    %c0_1 = arith.constant 0 : index
    %0 = vector.load %arg1[%c0, %c0_0, %c0_1] : memref<1x16x32xf32, #tpu.memory_space<vmem>>, vector<1x16x32xf32>
    %1 = vector.shape_cast %0 : vector<1x16x32xf32> to vector<16x32xf32>
    %c0_2 = arith.constant 0 : index
    %c0_3 = arith.constant 0 : index
    %c0_4 = arith.constant 0 : index
    %2 = vector.load %arg2[%c0_2, %c0_3, %c0_4] : memref<1x16x16xf32, #tpu.memory_space<vmem>>, vector<1x16x16xf32>
    %3 = vector.shape_cast %2 : vector<1x16x16xf32> to vector<16x16xf32>
    %cst = arith.constant 0.000000e+00 : f32
    %4 = vector.broadcast %cst : f32 to vector<16x16xf32>
    %5 = arith.cmpf ogt, %3, %4 : vector<16x16xf32>
    %c0_5 = arith.constant 0 : index
    %c0_6 = arith.constant 0 : index
    %6 = vector.load %arg3[%c0_5, %c0_6] : memref<32x16xf32, #tpu.memory_space<vmem>>, vector<32x16xf32>
    %c0_7 = arith.constant 0 : index
    %c0_8 = arith.constant 0 : index
    %7 = vector.load %arg4[%c0_7, %c0_8] : memref<1x16xf32, #tpu.memory_space<vmem>>, vector<1x16xf32>
    %c0_9 = arith.constant 0 : index
    %c0_10 = arith.constant 0 : index
    %8 = vector.load %arg5[%c0_9, %c0_10] : memref<32x16xf32, #tpu.memory_space<vmem>>, vector<32x16xf32>
    %c0_11 = arith.constant 0 : index
    %c0_12 = arith.constant 0 : index
    %9 = vector.load %arg6[%c0_11, %c0_12] : memref<32x16xf32, #tpu.memory_space<vmem>>, vector<32x16xf32>
    %c0_13 = arith.constant 0 : index
    %c0_14 = arith.constant 0 : index
    %10 = vector.load %arg7[%c0_13, %c0_14] : memref<1x16xf32, #tpu.memory_space<vmem>>, vector<1x16xf32>
    %cst_15 = arith.constant dense<0.000000e+00> : vector<16x16xf32>
    %11 = tpu.matmul %1, %6, %cst_15 {dimension_numbers = #tpu.dot_dimension_numbers<[1], [0], [0], [1], [0, 0, 1, 1], [], []>} : vector<16x32xf32>, vector<32x16xf32>, vector<16x16xf32> -> vector<16x16xf32>
    %cst_16 = arith.constant 0.000000e+00 : f32
    %12 = vector.broadcast %cst_16 : f32 to vector<16x16xf32>
    %13 = arith.maximumf %11, %12 : vector<16x16xf32>
    %cst_17 = arith.constant dense<0.000000e+00> : vector<1x16xf32>
    %14 = tpu.matmul %7, %13, %cst_17 {dimension_numbers = #tpu.dot_dimension_numbers<[1], [1], [0], [0], [0, 0, 1, 0], [], []>} : vector<1x16xf32>, vector<16x16xf32>, vector<1x16xf32> -> vector<1x16xf32>
    %15 = vector.shape_cast %14 : vector<1x16xf32> to vector<1x16xf32>
    %16 = vector.broadcast %15 : vector<1x16xf32> to vector<16x16xf32>
    %cst_18 = arith.constant -1.000000e+30 : f32
    %17 = vector.broadcast %cst_18 : f32 to vector<16x16xf32>
    %18 = arith.select %5, %16, %17 : vector<16x16xi1>, vector<16x16xf32>
    %cst_19 = arith.constant dense<0xFF800000> : vector<16xf32>
    %19 = vector.multi_reduction <maximumf>, %18, %cst_19 [1] : vector<16x16xf32> to vector<16xf32>
    %20 = vector.shape_cast %19 : vector<16xf32> to vector<16x1xf32>
    %21 = vector.broadcast %20 : vector<16x1xf32> to vector<16x16xf32>
    %22 = arith.subf %18, %21 : vector<16x16xf32>
    %23 = math.exp %22 : vector<16x16xf32>
    %cst_20 = arith.constant 0.000000e+00 : f32
    %24 = vector.broadcast %cst_20 : f32 to vector<16x16xf32>
    %25 = arith.select %5, %23, %24 : vector<16x16xi1>, vector<16x16xf32>
    %cst_21 = arith.constant dense<0.000000e+00> : vector<16xf32>
    %26 = vector.multi_reduction <add>, %25, %cst_21 [1] : vector<16x16xf32> to vector<16xf32>
    %27 = vector.shape_cast %26 : vector<16xf32> to vector<16x1xf32>
    %cst_22 = arith.constant 0.000000e+00 : f32
    %28 = vector.broadcast %cst_22 : f32 to vector<16x1xf32>
    %29 = arith.cmpf ogt, %27, %28 : vector<16x1xf32>
    %cst_23 = arith.constant 1.000000e+00 : f32
    %30 = vector.broadcast %cst_23 : f32 to vector<16x1xf32>
    %31 = arith.select %29, %27, %30 : vector<16x1xi1>, vector<16x1xf32>
    %32 = tpu.reciprocal %31 {approx = true} : vector<16x1xf32> -> vector<16x1xf32>
    %33 = vector.broadcast %32 : vector<16x1xf32> to vector<16x16xf32>
    %34 = arith.mulf %25, %33 : vector<16x16xf32>
    %cst_24 = arith.constant dense<0.000000e+00> : vector<16x32xf32>
    %35 = tpu.matmul %34, %1, %cst_24 {dimension_numbers = #tpu.dot_dimension_numbers<[1], [0], [0], [1], [0, 0, 1, 1], [], []>} : vector<16x16xf32>, vector<16x32xf32>, vector<16x32xf32> -> vector<16x32xf32>
    %cst_25 = arith.constant dense<0.000000e+00> : vector<16x16xf32>
    %36 = tpu.matmul %1, %8, %cst_25 {dimension_numbers = #tpu.dot_dimension_numbers<[1], [0], [0], [1], [0, 0, 1, 1], [], []>} : vector<16x32xf32>, vector<32x16xf32>, vector<16x16xf32> -> vector<16x16xf32>
    %cst_26 = arith.constant dense<0.000000e+00> : vector<16x16xf32>
    %37 = tpu.matmul %35, %9, %cst_26 {dimension_numbers = #tpu.dot_dimension_numbers<[1], [0], [0], [1], [0, 0, 1, 1], [], []>} : vector<16x32xf32>, vector<32x16xf32>, vector<16x16xf32> -> vector<16x16xf32>
    %38 = arith.addf %36, %37 : vector<16x16xf32>
    %39 = vector.broadcast %10 : vector<1x16xf32> to vector<16x16xf32>
    %40 = arith.addf %38, %39 : vector<16x16xf32>
    %cst_27 = arith.constant 0.000000e+00 : f32
    %41 = vector.broadcast %cst_27 : f32 to vector<16x16xf32>
    %42 = arith.maximumf %40, %41 : vector<16x16xf32>
    %c0_28 = arith.constant 0 : index
    %c0_29 = arith.constant 0 : index
    %43 = vector.load %arg8[%c0_28, %c0_29] : memref<16x8xf32, #tpu.memory_space<vmem>>, vector<16x8xf32>
    %c0_30 = arith.constant 0 : index
    %c0_31 = arith.constant 0 : index
    %44 = vector.load %arg9[%c0_30, %c0_31] : memref<1x8xf32, #tpu.memory_space<vmem>>, vector<1x8xf32>
    %c0_32 = arith.constant 0 : index
    %c0_33 = arith.constant 0 : index
    %45 = vector.load %arg10[%c0_32, %c0_33] : memref<16x8xf32, #tpu.memory_space<vmem>>, vector<16x8xf32>
    %c0_34 = arith.constant 0 : index
    %c0_35 = arith.constant 0 : index
    %46 = vector.load %arg11[%c0_34, %c0_35] : memref<16x8xf32, #tpu.memory_space<vmem>>, vector<16x8xf32>
    %c0_36 = arith.constant 0 : index
    %c0_37 = arith.constant 0 : index
    %47 = vector.load %arg12[%c0_36, %c0_37] : memref<1x8xf32, #tpu.memory_space<vmem>>, vector<1x8xf32>
    %cst_38 = arith.constant dense<0.000000e+00> : vector<16x8xf32>
    %48 = tpu.matmul %42, %43, %cst_38 {dimension_numbers = #tpu.dot_dimension_numbers<[1], [0], [0], [1], [0, 0, 1, 1], [], []>} : vector<16x16xf32>, vector<16x8xf32>, vector<16x8xf32> -> vector<16x8xf32>
    %cst_39 = arith.constant 0.000000e+00 : f32
    %49 = vector.broadcast %cst_39 : f32 to vector<16x8xf32>
    %50 = arith.maximumf %48, %49 : vector<16x8xf32>
    %cst_40 = arith.constant dense<0.000000e+00> : vector<1x16xf32>
    %51 = tpu.matmul %44, %50, %cst_40 {dimension_numbers = #tpu.dot_dimension_numbers<[1], [1], [0], [0], [0, 0, 1, 0], [], []>} : vector<1x8xf32>, vector<16x8xf32>, vector<1x16xf32> -> vector<1x16xf32>
    %52 = vector.shape_cast %51 : vector<1x16xf32> to vector<1x16xf32>
    %53 = vector.broadcast %52 : vector<1x16xf32> to vector<16x16xf32>
    %cst_41 = arith.constant -1.000000e+30 : f32
    %54 = vector.broadcast %cst_41 : f32 to vector<16x16xf32>
    %55 = arith.select %5, %53, %54 : vector<16x16xi1>, vector<16x16xf32>
    %cst_42 = arith.constant dense<0xFF800000> : vector<16xf32>
    %56 = vector.multi_reduction <maximumf>, %55, %cst_42 [1] : vector<16x16xf32> to vector<16xf32>
    %57 = vector.shape_cast %56 : vector<16xf32> to vector<16x1xf32>
    %58 = vector.broadcast %57 : vector<16x1xf32> to vector<16x16xf32>
    %59 = arith.subf %55, %58 : vector<16x16xf32>
    %60 = math.exp %59 : vector<16x16xf32>
    %cst_43 = arith.constant 0.000000e+00 : f32
    %61 = vector.broadcast %cst_43 : f32 to vector<16x16xf32>
    %62 = arith.select %5, %60, %61 : vector<16x16xi1>, vector<16x16xf32>
    %cst_44 = arith.constant dense<0.000000e+00> : vector<16xf32>
    %63 = vector.multi_reduction <add>, %62, %cst_44 [1] : vector<16x16xf32> to vector<16xf32>
    %64 = vector.shape_cast %63 : vector<16xf32> to vector<16x1xf32>
    %cst_45 = arith.constant 0.000000e+00 : f32
    %65 = vector.broadcast %cst_45 : f32 to vector<16x1xf32>
    %66 = arith.cmpf ogt, %64, %65 : vector<16x1xf32>
    %cst_46 = arith.constant 1.000000e+00 : f32
    %67 = vector.broadcast %cst_46 : f32 to vector<16x1xf32>
    %68 = arith.select %66, %64, %67 : vector<16x1xi1>, vector<16x1xf32>
    %69 = tpu.reciprocal %68 {approx = true} : vector<16x1xf32> -> vector<16x1xf32>
    %70 = vector.broadcast %69 : vector<16x1xf32> to vector<16x16xf32>
    %71 = arith.mulf %62, %70 : vector<16x16xf32>
    %cst_47 = arith.constant dense<0.000000e+00> : vector<16x16xf32>
    %72 = tpu.matmul %71, %42, %cst_47 {dimension_numbers = #tpu.dot_dimension_numbers<[1], [0], [0], [1], [0, 0, 1, 1], [], []>} : vector<16x16xf32>, vector<16x16xf32>, vector<16x16xf32> -> vector<16x16xf32>
    %cst_48 = arith.constant dense<0.000000e+00> : vector<16x8xf32>
    %73 = tpu.matmul %42, %45, %cst_48 {dimension_numbers = #tpu.dot_dimension_numbers<[1], [0], [0], [1], [0, 0, 1, 1], [], []>} : vector<16x16xf32>, vector<16x8xf32>, vector<16x8xf32> -> vector<16x8xf32>
    %cst_49 = arith.constant dense<0.000000e+00> : vector<16x8xf32>
    %74 = tpu.matmul %72, %46, %cst_49 {dimension_numbers = #tpu.dot_dimension_numbers<[1], [0], [0], [1], [0, 0, 1, 1], [], []>} : vector<16x16xf32>, vector<16x8xf32>, vector<16x8xf32> -> vector<16x8xf32>
    %75 = arith.addf %73, %74 : vector<16x8xf32>
    %76 = vector.broadcast %47 : vector<1x8xf32> to vector<16x8xf32>
    %77 = arith.addf %75, %76 : vector<16x8xf32>
    %cst_50 = arith.constant 0.000000e+00 : f32
    %78 = vector.broadcast %cst_50 : f32 to vector<16x8xf32>
    %79 = arith.maximumf %77, %78 : vector<16x8xf32>
    %80 = tpu.iota {dimensions = array<i32: 1>} : vector<1x16xi32>
    %c14_i32 = arith.constant 14 : i32
    %81 = vector.broadcast %c14_i32 : i32 to vector<1x16xi32>
    %82 = arith.cmpi eq, %80, %81 : vector<1x16xi32>
    %83 = arith.extui %82 : vector<1x16xi1> to vector<1x16xi32>
    %84 = arith.sitofp %83 : vector<1x16xi32> to vector<1x16xf32>
    %cst_51 = arith.constant dense<0.000000e+00> : vector<1x8xf32>
    %85 = tpu.matmul %84, %79, %cst_51 {dimension_numbers = #tpu.dot_dimension_numbers<[1], [0], [0], [1], [0, 0, 1, 1], [], []>} : vector<1x16xf32>, vector<16x8xf32>, vector<1x8xf32> -> vector<1x8xf32>
    %c0_52 = arith.constant 0 : index
    %c0_53 = arith.constant 0 : index
    %86 = vector.load %arg13[%c0_52, %c0_53] : memref<8x20xf32, #tpu.memory_space<vmem>>, vector<8x20xf32>
    %cst_54 = arith.constant dense<0.000000e+00> : vector<1x20xf32>
    %87 = tpu.matmul %85, %86, %cst_54 {dimension_numbers = #tpu.dot_dimension_numbers<[1], [0], [0], [1], [0, 0, 1, 1], [], []>} : vector<1x8xf32>, vector<8x20xf32>, vector<1x20xf32> -> vector<1x20xf32>
    %c0_55 = arith.constant 0 : index
    %c0_56 = arith.constant 0 : index
    %88 = vector.load %arg14[%c0_55, %c0_56] : memref<1x20xf32, #tpu.memory_space<vmem>>, vector<1x20xf32>
    %89 = arith.addf %87, %88 : vector<1x20xf32>
    %c0_57 = arith.constant 0 : index
    %c0_58 = arith.constant 0 : index
    %90 = vector.load %arg15[%c0_57, %c0_58] : memref<20x10xf32, #tpu.memory_space<vmem>>, vector<20x10xf32>
    %cst_59 = arith.constant dense<0.000000e+00> : vector<1x10xf32>
    %91 = tpu.matmul %89, %90, %cst_59 {dimension_numbers = #tpu.dot_dimension_numbers<[1], [0], [0], [1], [0, 0, 1, 1], [], []>} : vector<1x20xf32>, vector<20x10xf32>, vector<1x10xf32> -> vector<1x10xf32>
    %c0_60 = arith.constant 0 : index
    %c0_61 = arith.constant 0 : index
    %92 = vector.load %arg16[%c0_60, %c0_61] : memref<1x10xf32, #tpu.memory_space<vmem>>, vector<1x10xf32>
    %93 = arith.addf %91, %92 : vector<1x10xf32>
    %cst_62 = arith.constant 0.000000e+00 : f32
    %94 = vector.broadcast %cst_62 : f32 to vector<1x10xf32>
    %95 = arith.maximumf %93, %94 : vector<1x10xf32>
    %c0_63 = arith.constant 0 : index
    %c0_64 = arith.constant 0 : index
    %96 = vector.load %arg17[%c0_63, %c0_64] : memref<10x2xf32, #tpu.memory_space<vmem>>, vector<10x2xf32>
    %cst_65 = arith.constant dense<0.000000e+00> : vector<1x2xf32>
    %97 = tpu.matmul %95, %96, %cst_65 {dimension_numbers = #tpu.dot_dimension_numbers<[1], [0], [0], [1], [0, 0, 1, 1], [], []>} : vector<1x10xf32>, vector<10x2xf32>, vector<1x2xf32> -> vector<1x2xf32>
    %c0_66 = arith.constant 0 : index
    %c0_67 = arith.constant 0 : index
    %98 = vector.load %arg18[%c0_66, %c0_67] : memref<1x2xf32, #tpu.memory_space<vmem>>, vector<1x2xf32>
    %99 = arith.addf %97, %98 : vector<1x2xf32>
    %cst_68 = arith.constant 0.000000e+00 : f32
    %100 = vector.broadcast %cst_68 : f32 to vector<1x2xf32>
    %101 = arith.maximumf %99, %100 : vector<1x2xf32>
    %c0_69 = arith.constant 0 : index
    %c0_70 = arith.constant 0 : index
    %102 = vector.load %arg19[%c0_69, %c0_70] : memref<1x2xf32, #tpu.memory_space<vmem>>, vector<1x2xf32>
    %103 = arith.mulf %101, %102 : vector<1x2xf32>
    %cst_71 = arith.constant dense<0.000000e+00> : vector<1xf32>
    %104 = vector.multi_reduction <add>, %103, %cst_71 [1] : vector<1x2xf32> to vector<1xf32>
    %105 = vector.shape_cast %104 : vector<1xf32> to vector<1x1xf32>
    %c0_72 = arith.constant 0 : index
    %c0_73 = arith.constant 0 : index
    %106 = vector.load %arg20[%c0_72, %c0_73] : memref<1x1xf32, #tpu.memory_space<vmem>>, vector<1x1xf32>
    %107 = arith.addf %105, %106 : vector<1x1xf32>
    %108 = vector.shape_cast %107 : vector<1x1xf32> to vector<1x1xf32>
    %109 = vector.broadcast %108 : vector<1x1xf32> to vector<1x128xf32>
    %c0_74 = arith.constant 0 : index
    %c0_75 = arith.constant 0 : index
    %c0_76 = arith.constant 0 : index
    %110 = vector.load %arg21[%c0_74, %c0_75, %c0_76] : memref<1x1x128xf32, #tpu.memory_space<vmem>>, vector<1x1x128xf32>
    %111 = vector.shape_cast %110 : vector<1x1x128xf32> to vector<1x128xf32>
    %112 = vector.shape_cast %109 : vector<1x128xf32> to vector<1x1x128xf32>
    tpu.vector_store %arg21[%c0_74, %c0_75, %c0_76], %112 {strides = array<i32>} : memref<1x1x128xf32, #tpu.memory_space<vmem>>, vector<1x1x128xf32>,
    return
  }
  func.func @transform_0(%arg0: i32) -> (i32, i32, i32) {
    %c0_i32 = arith.constant 0 : i32
    %c0_i32_0 = arith.constant 0 : i32
    %c0_i32_1 = arith.constant 0 : i32
    return %arg0, %c0_i32, %c0_i32_0 : i32, i32, i32
  }
  func.func @transform_1(%arg0: i32) -> (i32, i32, i32) {
    %c0_i32 = arith.constant 0 : i32
    %c0_i32_0 = arith.constant 0 : i32
    %c0_i32_1 = arith.constant 0 : i32
    return %arg0, %c0_i32, %c0_i32_0 : i32, i32, i32
  }
  func.func @transform_2(%arg0: i32) -> (i32, i32) {
    %c0_i32 = arith.constant 0 : i32
    %c0_i32_0 = arith.constant 0 : i32
    %c0_i32_1 = arith.constant 0 : i32
    return %c0_i32, %c0_i32_0 : i32, i32
  }
  func.func @transform_3(%arg0: i32) -> (i32, i32) {
    %c0_i32 = arith.constant 0 : i32
    %c0_i32_0 = arith.constant 0 : i32
    %c0_i32_1 = arith.constant 0 : i32
    return %c0_i32, %c0_i32_0 : i32, i32
  }
  func.func @transform_4(%arg0: i32) -> (i32, i32) {
    %c0_i32 = arith.constant 0 : i32
    %c0_i32_0 = arith.constant 0 : i32
    %c0_i32_1 = arith.constant 0 : i32
    return %c0_i32, %c0_i32_0 : i32, i32
  }
  func.func @transform_5(%arg0: i32) -> (i32, i32) {
    %c0_i32 = arith.constant 0 : i32
    %c0_i32_0 = arith.constant 0 : i32
    %c0_i32_1 = arith.constant 0 : i32
    return %c0_i32, %c0_i32_0 : i32, i32
  }
  func.func @transform_6(%arg0: i32) -> (i32, i32) {
    %c0_i32 = arith.constant 0 : i32
    %c0_i32_0 = arith.constant 0 : i32
    %c0_i32_1 = arith.constant 0 : i32
    return %c0_i32, %c0_i32_0 : i32, i32
  }
  func.func @transform_7(%arg0: i32) -> (i32, i32) {
    %c0_i32 = arith.constant 0 : i32
    %c0_i32_0 = arith.constant 0 : i32
    %c0_i32_1 = arith.constant 0 : i32
    return %c0_i32, %c0_i32_0 : i32, i32
  }
  func.func @transform_8(%arg0: i32) -> (i32, i32) {
    %c0_i32 = arith.constant 0 : i32
    %c0_i32_0 = arith.constant 0 : i32
    %c0_i32_1 = arith.constant 0 : i32
    return %c0_i32, %c0_i32_0 : i32, i32
  }
  func.func @transform_9(%arg0: i32) -> (i32, i32) {
    %c0_i32 = arith.constant 0 : i32
    %c0_i32_0 = arith.constant 0 : i32
    %c0_i32_1 = arith.constant 0 : i32
    return %c0_i32, %c0_i32_0 : i32, i32
  }
  func.func @transform_10(%arg0: i32) -> (i32, i32) {
    %c0_i32 = arith.constant 0 : i32
    %c0_i32_0 = arith.constant 0 : i32
    %c0_i32_1 = arith.constant 0 : i32
    return %c0_i32, %c0_i32_0 : i32, i32
  }
  func.func @transform_11(%arg0: i32) -> (i32, i32) {
    %c0_i32 = arith.constant 0 : i32
    %c0_i32_0 = arith.constant 0 : i32
    %c0_i32_1 = arith.constant 0 : i32
    return %c0_i32, %c0_i32_0 : i32, i32
  }
  func.func @transform_12(%arg0: i32) -> (i32, i32) {
    %c0_i32 = arith.constant 0 : i32
    %c0_i32_0 = arith.constant 0 : i32
    %c0_i32_1 = arith.constant 0 : i32
    return %c0_i32, %c0_i32_0 : i32, i32
  }
  func.func @transform_13(%arg0: i32) -> (i32, i32) {
    %c0_i32 = arith.constant 0 : i32
    %c0_i32_0 = arith.constant 0 : i32
    %c0_i32_1 = arith.constant 0 : i32
    return %c0_i32, %c0_i32_0 : i32, i32
  }
  func.func @transform_14(%arg0: i32) -> (i32, i32) {
    %c0_i32 = arith.constant 0 : i32
    %c0_i32_0 = arith.constant 0 : i32
    %c0_i32_1 = arith.constant 0 : i32
    return %c0_i32, %c0_i32_0 : i32, i32
  }
  func.func @transform_15(%arg0: i32) -> (i32, i32) {
    %c0_i32 = arith.constant 0 : i32
    %c0_i32_0 = arith.constant 0 : i32
    %c0_i32_1 = arith.constant 0 : i32
    return %c0_i32, %c0_i32_0 : i32, i32
  }
  func.func @transform_16(%arg0: i32) -> (i32, i32) {
    %c0_i32 = arith.constant 0 : i32
    %c0_i32_0 = arith.constant 0 : i32
    %c0_i32_1 = arith.constant 0 : i32
    return %c0_i32, %c0_i32_0 : i32, i32
  }
  func.func @transform_17(%arg0: i32) -> (i32, i32) {
    %c0_i32 = arith.constant 0 : i32
    %c0_i32_0 = arith.constant 0 : i32
    %c0_i32_1 = arith.constant 0 : i32
    return %c0_i32, %c0_i32_0 : i32, i32
  }
  func.func @transform_18(%arg0: i32) -> (i32, i32) {
    %c0_i32 = arith.constant 0 : i32
    %c0_i32_0 = arith.constant 0 : i32
    %c0_i32_1 = arith.constant 0 : i32
    return %c0_i32, %c0_i32_0 : i32, i32
  }
  func.func @transform_19(%arg0: i32) -> (i32, i32) {
    %c0_i32 = arith.constant 0 : i32
    %c0_i32_0 = arith.constant 0 : i32
    %c0_i32_1 = arith.constant 0 : i32
    return %c0_i32, %c0_i32_0 : i32, i32
  }
  func.func @transform_20(%arg0: i32) -> (i32, i32, i32) {
    %c0_i32 = arith.constant 0 : i32
    %c0_i32_0 = arith.constant 0 : i32
    %c0_i32_1 = arith.constant 0 : i32
    return %arg0, %c0_i32, %c0_i32_0 : i32, i32, i32
  }
}

</mosaic_0001>

<bundles_post_ra>
// kernel: tpu_custom_call.1
= control target key start
LH: loop header
LB: loop body
LE: loop exit
PB: predicated region body
PF: predicated region fallthrough
CT: control target
= control target key end

     0   :  { %s1900_s0 = inlined_call_operand.vmem [shape: f32[4,16,32], index: 0, kind: input, shape index: {}]   ;;  %s1901_s1 = inlined_call_operand.hbm [shape: f32[4,16,16], index: 1, kind: input, shape index: {}]   ;;  %s1902_s2 = inlined_call_operand.vmem [shape: f32[32,16], index: 2, kind: input, shape index: {}]   ;;  %s1903_s3 = inlined_call_operand.vmem [shape: f32[1,16], index: 3, kind: input, shape index: {}]   ;;  %s1904_s4 = inlined_call_operand.vmem [shape: f32[32,16], index: 4, kind: input, shape index: {}]   ;;  %s1905_s5 = inlined_call_operand.vmem [shape: f32[32,16], index: 5, kind: input, shape index: {}]   ;;  %s1906_s6 = inlined_call_operand.vmem [shape: f32[1,16], index: 6, kind: input, shape index: {}]   ;;  %s1907_s7 = inlined_call_operand.vmem [shape: f32[16,8], index: 7, kind: input, shape index: {}]   ;;  %s1908_s8 = inlined_call_operand.vmem [shape: f32[1,8], index: 8, kind: input, shape index: {}]   ;;  %s1909_s9 = inlined_call_operand.vmem [shape: f32[16,8], index: 9, kind: input, shape index: {}]   ;;  %s1910_s10 = inlined_call_operand.vmem [shape: f32[16,8], index: 10, kind: input, shape index: {}]   ;;  %s1911_s11 = inlined_call_operand.vmem [shape: f32[1,8], index: 11, kind: input, shape index: {}]   ;;  %s1912_s12 = inlined_call_operand.vmem [shape: f32[8,20], index: 12, kind: input, shape index: {}]   ;;  %s1913_s13 = inlined_call_operand.vmem [shape: f32[1,20], index: 13, kind: input, shape index: {}]   ;;  %s1914_s14 = inlined_call_operand.vmem [shape: f32[20,10], index: 14, kind: input, shape index: {}]   ;;  %s1915_s15 = inlined_call_operand.vmem [shape: f32[1,10], index: 15, kind: input, shape index: {}]   ;;  %s1916_s16 = inlined_call_operand.vmem [shape: f32[10,2], index: 16, kind: input, shape index: {}]   ;;  %s1917_s17 = inlined_call_operand.vmem [shape: f32[1,2], index: 17, kind: input, shape index: {}]   ;;  %s1918_s18 = inlined_call_operand.vmem [shape: f32[1,2], index: 18, kind: input, shape index: {}]   ;;  %s1919_s19 = inlined_call_operand.<no memory space> [shape: f32[1,1], index: 19, kind: input, shape index: {}]   ;;  %s1920_s20 = inlined_call_operand.hbm [shape: f32[4,1,128], index: 20, kind: output, shape index: {}]  }
   0x1   :  { %1933 = sst [smem:[#allocation15_spill]] %s1900_s0  ;;  %v25_v0 = vstv %s1919_s19 }
   0x2   :  { %1934 = sst [smem:[#allocation16_spill]] %s1901_s1  ;;  %26 = vst [vmem:[#allocation2] sm:$0x1] %v25_v0 }
   0x3   :  { %1935 = sst [smem:[#allocation17_spill]] %s1902_s2 }
   0x4   :  { %1936 = sst [smem:[#allocation18_spill]] %s1903_s3 }
   0x5   :  { %1937 = sst [smem:[#allocation19_spill]] %s1904_s4 }
   0x6   :  { %1938 = sst [smem:[#allocation20_spill]] %s1917_s17 }
   0x7   :  { %1939 = sst [smem:[#allocation21_spill]] %s1918_s18 }
   0x8   :  { %1940 = sst [smem:[#allocation22_spill]] %s1920_s20 }
   0x9   :  { %27 = vsyncpa [#allocation4], 0 }
   0xa   :  { %29 = vsyncpa [#allocation4 + $0x1], 0 }
   0xb   :  { %30 = vsyncpa [#allocation5], 0 }
   0xc   :  { %32 = vsyncpa [#allocation5 + $0x1], 0  ;;  %s1605_s23 = smov 0   ;;  %s1607_s24 = smov 0  }
   0xd   :  { %s1609_s2 = smov 0   ;;  %s1611_s25 = smov 0  }
   0xe LB: > { %1941 = sst [smem:[#allocation9_spill]] %s1479_s23  ;;  %s1626_s19 = sadd.s32 4294967295, %s1491_s25   ;;  %s1491_s25 = sphi %s1611_s25, %s1965_s25   ;;  %s1487_s2 = sphi %s1609_s2, %s1967_s2   ;;  %s1483_s24 = sphi %s1607_s24, %s1969_s24   ;;  %s1479_s23 = sphi %s1605_s23, %s1968_s23  }
   0xf   : > { %1942 = sst [smem:[#allocation10_spill]] %s1487_s2  ;;  %s1283_s3 = sadd.s32 4294967294, %s1491_s25  }
  0x10   : > { %s1630_s26 = sadd.s32 1, %s1491_s25   ;;  %s71_s27 = sadd.s32 1, %s1487_s2 }
  0x11   : > { %1943 = sst [smem:[#allocation11_spill]] %s1630_s26  ;;  %s68_s28 = ssub.s32 %s1491_s25, %s1630_s26 }
  0x12   : > { %p78_p0 = scmp.ne.s32.totalorder %s1487_s2, %s1483_s24  ;;  %p69_p1 = scmp.eq.s32.totalorder %s68_s28, 0 }
  0x13   : > { %p79_p2 = scmp.eq.s32.totalorder %s1491_s25, 0  ;;  %p84_p3 = scmp.ne.s32.totalorder %s1483_s24, %s1479_s23 }
  0x14   : > { %p85_p4 = scmp.eq.s32.totalorder %s1626_s19, 0  ;;  %p486_p7 = scmp.eq.s32.totalorder %s1626_s19, 3 }
  0x15   : > { %s1642_s4 = scalar_select %p69_p1, %s1487_s2, %s71_s27  }
  0x16   : > { %p1644_p5 = por %p79_p2, %p78_p0  ;;  %p1648_p6 = por %p85_p4, %p84_p3 }
  0x17   : > { %1944 = sst [smem:[#allocation12_spill]] %s1642_s4  ;;  %p492_p8 = scmp.eq.s32.totalorder %s1283_s3, 3 }
  0x18   : > { %p1338_p9 = scmp.lt.s32.totalorder %s1491_s25, 4  ;;  %p1654_p10 = por %p486_p7, %p78_p0 }
  0x19   : > { %p1658_p11 = por %p492_p8, %p84_p3  ;;  %s574_s1 = sand.u32 1, %s1487_s2  }
  0x1a   : > { %s1947_s0 = scalar_select %p1654_p10, 1, 0 }
  0x1b   : > { %s1949_s21 = scalar_select %p1658_p11, 1, 0 }
  0x1c   : > { %1948 = sst [smem:[#allocation13_spill]] %s1947_s0  ;;  %s1324_s22 = sshll.u32 %s1491_s25, 4 }
  0x1d   : > { %1950 = sst [smem:[#allocation14_spill]] %s1949_s21  ;;  %s1286_s27 = sshll.u32 %s574_s1, 4 }
  0x1e   : > { %s1951_s26 = sld [smem:[#allocation16_spill]]  ;;  %s578_s18 = scalar_lea.vmem [#allocation3], %s1286_s27 }
  0x1f   : > { %s586_s17 = sshll.u32 %s578_s18, 4  ;;  %p1669_p12 = pnand %p1338_p9, %p1644_p5  ;;  %s587_s17 = int_to_ptr.vmem [resolvable:$true] %s586_s17 }
  0x20   : > { %p1289_p13 = scmp.ge.s32.totalorder %s1491_s25, 1  ;;  %p594_p0 = scmp.lt.s32.totalorder %s1491_s25, 5 }
  0x21   : > { %s575_s2 = scalar_lea.sflag [#allocation4], %s574_s1  ;;  %p1399_p2 = pneg %p1669_p12 }
  0x24   : > { %s583_s23 = scalar_lea.hbm %s1951_s26, %s1324_s22  ;;  %s1402_s4 = scalar_lea.hbm %s1951_s26, 64 }
  0x25   : > { %s584_s20 = sshll.u32 %s583_s23, 4  ;;  %s585_s20 = int_to_ptr.hbm [resolvable:$true] %s584_s20 }
  0x26   : > { %s1395_s21 = sshra.s32 %s585_s20, 4  ;;  %s1396_s21 = int_to_ptr.hbm [resolvable:$true] %s1395_s21 }
  0x27   : > { %s1397_s0 = scalar_lea.hbm %s1396_s21, 16  ;;  %p1403_p5 = scmp.lt.s32.totalorder %s1396_s21, %s1951_s26 }
  0x28   : > { %p1398_p1 = scmp.ne.s32.totalorder %s1396_s21, %s1397_s0  ;;  %p1404_p7 = scmp.lt.s32.totalorder %s1402_s4, %s1397_s0 }
  0x2a   : > { %p1400_p3 = pnand %p1399_p2, %p1398_p1  ;;  %p1405_p8 = por %p1404_p7, %p1403_p5 }
  0x2c   : > { %p1401_p4 = pneg %p1400_p3 }
  0x2e   : > { %p1406_p9 = pnand %p1405_p8, %p1401_p4 }
  0x30   : > { %1409 = shalt.err (!%p1406_p9)
}
  0x31   : > { %s1493_s1 = smov 128   ;;  %s1494_s27 = smov 8  }
  0x32   : > { %1333 = dma.hbm_to_vmem [thread:$0]  (!%p1669_p12), %s585_s20, 256, %s587_s17, %s575_s2, %s1493_s1, %s1493_s1, %s1494_s27  }
  0x33   : > { %p595_p1 = pnand %p1289_p13, %p594_p0 }
  0x34   : > { %s1690_s28 = sand.u32 (!%p595_p1), 1, %s1483_s24  }
  0x35   : > { %598 = sbr.rel (%p595_p1) target bundleno = 2453 (0x995), region = 100  ;;  %s1290_s0 = sshll.u32 (!%p595_p1), %s1690_s28, 4 }
  0x36   : > { %s601_s21 = scalar_lea.sflag (!%p595_p1), [#allocation4], %s1690_s28  ;;  %s1694_s18 = scalar_lea.vmem (!%p595_p1), [#allocation3], %s1290_s0 }
  0x3a   : > { %1470 = dma.done.wait (%p1648_p6), %s601_s21, 256  }
  0x3b   : > { %1472 = vsyncadd (%p1648_p6), %s601_s21, 4294967040  ;;  %p666_p12 = scmp.lt.s32.totalorder %s1626_s19, 3  ;;  %s1953_s23 = sld [smem:[#allocation17_spill]]  ;;  %vm691_vm0 = vcmask 261120   ;;  %vm723_vm1 = vcmask 130048   ;;  %v1734_v12 = vld [vmem:[%s1694_s18] sm:$0xff] }
  0x3c   : > { %s1955_s0 = sld [smem:[#allocation15_spill]]  ;;  %vm675_vm2 = vcmp.gt.f32.partialorder %v1734_v12, 0.0  ;;  %v1740_v16 = vld [vmem:[%s1694_s18 + $0x8] sm:$0xff]  ;;  %vm911_vm6 = vcmask 64512   ;;  %vm1121_vm10 = vcmask 1043456   ;;  %vm1153_vm11 = vcmask 1041408  }
  0x3d   : > { %s667_s17 = scalar_select %p666_p12, %s1626_s19, 3  ;;  %vm676_vm3 = vcmp.gt.f32.partialorder %v1740_v16, 0.0  ;;  %v689_v32 = vld [vmem:[%s1905_s5 + $0x18] sm:$0xff]  ;;  %v688_v33 = vld [vmem:[%s1905_s5 + $0x10] sm:$0xff]  ;;  %v687_v34 = vld [vmem:[%s1905_s5 + $0x8] sm:$0xff]  ;;  %vm1117_vm12 = vcmask 162816  }
  0x3e   : > { %s1956_s3 = sld [smem:[#allocation18_spill]]  ;;  %831 = vmatpush.msra.mxu3 %v689_v32  ;;  %v686_v43 = vld [vmem:[%s1905_s5] sm:$0xff]  ;;  %v873_v50 = vld [vmem:[%s1907_s7 + $0x8] sm:$0xff]  ;;  %vm1149_vm13 = vcmask 80896   ;;  %vm1180_vm14 = vcmask 8192   ;;  %s1193_s18 = scalar_lea.sflag [#allocation5], %s1690_s28 }
  0x3f   : > { %s1325_s20 = sshll.u32 %s667_s17, 4  ;;  %s1957_s2 = sld [smem:[#allocation19_spill]]  ;;  %v876_v51 = vld [vmem:[%s1909_s9 + $0x8] sm:$0xff]  ;;  %v872_v52 = vld [vmem:[%s1907_s7] sm:$0xff] }
  0x40   : > { %832 = vmatpush.msra.mxu3 %v688_v33  ;;  %v875_v53 = vld [vmem:[%s1909_s9] sm:$0xff]  ;;  %s1960_s1 = sld [smem:[#allocation21_spill]] }
  0x41   : > { %s1954_s4 = smov %s1953_s23  ;;  %v680_v1 = vld [vmem:[%s1953_s23 + $0x18] sm:$0xff]  ;;  %v1377_v55 = vld [vmem:[%s1906_s6] ss:$0 sm:$0xff]  ;;  %s1959_s23 = sld [smem:[#allocation20_spill]] }
  0x42   : > { %v679_v2 = vld [vmem:[%s1954_s4 + $0x10] sm:$0xff]  ;;  %s670_s26 = scalar_lea.vmem %s1955_s0, %s1325_s20  ;;  %710 = vmatpush.msra.mxu0 %v680_v1  ;;  %v678_v4 = vld [vmem:[%s1954_s4 + $0x8] sm:$0xff]  ;;  %v677_v6 = vld [vmem:[%s1954_s4] sm:$0xff]  ;;  %833 = vmatpush.msra.mxu3 %v687_v34  ;;  %s1962_s21 = sld [smem:[#allocation22_spill]] }
  0x43   : > { %v1711_v3 = vld [vmem:[%s670_s26 + $0x8] sm:$0xff]  ;;  %v1717_v5 = vld [vmem:[%s670_s26] sm:$0xff] }
  0x44   : > { %804 = vmatpush.msra.mxu2 %v1711_v3  ;;  %711 = vmatpush.msra.mxu0 %v679_v2  ;;  %v681_v11 = vld [vmem:[%s1956_s3] sm:$0x1] }
  0x45   : > { %s1958_s26 = smov %s1957_s2  ;;  %v685_v44 = vld [vmem:[%s1957_s2 + $0x18] sm:$0xff]  ;;  %834 = vmatpush.msra.mxu3 %v686_v43  ;;  %v877_v33 = vld [vmem:[%s1910_s10] sm:$0xff]  ;;  %s665_s2 = scalar_lea.vmem [#allocation6], %s1690_s28 }
  0x46   : > { %805 = vmatpush.msra.mxu2 %v1717_v5  ;;  %712 = vmatpush.msra.mxu0 %v678_v4  ;;  %v684_v45 = vld [vmem:[%s1958_s26 + $0x10] sm:$0xff]  ;;  %v683_v46 = vld [vmem:[%s1958_s26 + $0x8] sm:$0xff]  ;;  %v682_v47 = vld [vmem:[%s1958_s26] sm:$0xff]  ;;  %s1203_s20 = sshll.u32 %s665_s2, 4  ;;  %s1204_s20 = int_to_ptr.vmem [resolvable:$true] %s1203_s20 }
  0x48   : > { %713 = vmatpush.msra.mxu0 %v677_v6  ;;  %900 = vmatpush.msrb.mxu2 %v873_v50  ;;  %v1495_v50 = vmov 0.0   ;;  %s1201_s17 = scalar_lea.hbm %s1962_s21, %s1626_s19  ;;  %s1445_s0 = scalar_lea.hbm %s1962_s21, 4 }
  0x49   : > { %1293 = vmatmul.msk.f32.vlgmr.msra.gmra.mxu0 %vm691_vm0, %v1717_v5  ;;  %s1205_s3 = sshll.u32 %s1201_s17, 4  ;;  %s1206_s3 = int_to_ptr.hbm [resolvable:$true] %s1205_s3 }
  0x4a   : > { %901 = vmatpush.msrb.mxu2 %v872_v52  ;;  %v1115_v52 = vld [vmem:[%s1914_s14 + $0x10] sm:$0xf] }
  0x51   : > { %1294 = vmatmul.msk.f32.gmra.mxu0 %vm691_vm0, %v1711_v3 }
  0xc6   : > { %v715_v7 = vpop.f32.mrf.mxu0 }
  0xc7   : > { %v721_v10 = vmax.f32 %v715_v7, 0.0 }
  0xce   : > { %v718_v8 = vpop.f32.mrf.mxu0 }
  0xcf   : > { %v722_v9 = vmax.f32 %v718_v8, 0.0 }
  0xd1   : > { %1295 = vmatpush.xpose.msk.msra.mxu1 %vm723_vm1, %v722_v9 }
  0xd5   : > { %1296 = vmatpush.xpose.msk.msra.mxu1 %vm723_vm1, %v721_v10 }
  0xd8   : > { %1297 = vmatmul.msk.f32.vlgmr.msra.gmra.mxu1 %vm723_vm1, %v681_v11 }
  0xd9   : > { %854 = vmatpush.msrb.mxu1 %v685_v44 }
  0xdb   : > { %855 = vmatpush.msrb.mxu1 %v684_v45 }
  0xdd   : > { %856 = vmatpush.msrb.mxu1 %v683_v46 }
  0xdf   : > { %857 = vmatpush.msrb.mxu1 %v682_v47 }
  0xe0   : > { %1302 = vmatmul.msk.f32.vlgmr.msrb.gmra.mxu1 %vm691_vm0, %v1717_v5  ;;  %v874_v5 = vld [vmem:[%s1908_s8] sm:$0x1] }
  0xe1   : > { %1044 = vmatpush.msra.mxu1 %v876_v51 }
  0xe3   : > { %1045 = vmatpush.msra.mxu1 %v875_v53  ;;  %v1114_v53 = vld [vmem:[%s1914_s14 + $0x8] sm:$0xff] }
  0xe8   : > { %1303 = vmatmul.msk.f32.gmra.mxu1 %vm691_vm0, %v1711_v3 }
 0x155   : > { %v750_v13 = vpop.f32.mrf.mxu1 }
 0x156   : > { %v753_v14 = vperm.slane %v750_v13, 0 }
 0x158   : > { %v754_v15 = vsel %vm675_vm2, %v753_v14, -1e+30  ;;  %v755_v18 = vsel %vm676_vm3, %v753_v14, -1e+30 }
 0x159   : > { %v756_v17 = vsel %vm723_vm1, %v754_v15, -inf  ;;  %v759_v19 = vsel %vm723_vm1, %v755_v18, -inf }
 0x15a   : > { %757 = vmax.xlane.f32.xlu0 %v756_v17 }
 0x15d   : > { %v859_v54 = vpop.f32.mrf.mxu1 }
 0x162   : > { %760 = vmax.xlane.f32.xlu0 %v759_v19 }
 0x165   : > { %v862_v60 = vpop.f32.mrf.mxu1 }
 0x1cd   : > { %v758_v20 = vpop.xlane.xlu0 %757 }
 0x1ce   : > { %v762_v21 = vsub.f32 %v754_v15, %v758_v20 }
 0x1d0   : > { %v764_v22 = vmul.f32 1.442695, %v762_v21 }
 0x1d2   : > { %1379 = vpow2.f32 %v764_v22 }
 0x1d5   : > { %v761_v23 = vpop.xlane.xlu0 %760 }
 0x1d6   : > { %v763_v24 = vsub.f32 %v755_v18, %v761_v23 }
 0x1d8   : > { %v1380_v25 = vpop.eup %1379  ;;  %v766_v26 = vmul.f32 1.442695, %v763_v24 }
 0x1d9   : > { %v768_v27 = vsel %vm675_vm2, %v1380_v25, 0.0 }
 0x1da   : > { %1381 = vpow2.f32 %v766_v26  ;;  %v770_v28 = vsel %vm723_vm1, %v768_v27, 0.0  ;;  %v878_v26 = vld [vmem:[%s1910_s10 + $0x8] sm:$0xff] }
 0x1db   : > { %771 = vadd.xlane.f32.xlu1 %v770_v28 }
 0x1e0   : > { %v1382_v29 = vpop.eup %1381 }
 0x1e1   : > { %v769_v30 = vsel %vm676_vm3, %v1382_v29, 0.0 }
 0x1e2   : > { %v773_v31 = vsel %vm723_vm1, %v769_v30, 0.0 }
 0x1e3   : > { %774 = vadd.xlane.f32.xlu1 %v773_v31 }
 0x24e   : > { %v772_v35 = vpop.xlane.xlu1 %771 }
 0x24f   : > { %vm776_vm4 = vcmp.gt.f32.partialorder %v772_v35, 0.0 }
 0x250   : > { %v778_v36 = vsel %vm776_vm4, %v772_v35, 1.0 }
 0x251   : > { %1383 = vrcp.f32 %v778_v36  ;;  %v1088_v36 = vld [vmem:[%s1912_s12] sm:$0xff] }
 0x256   : > { %v775_v37 = vpop.xlane.xlu1 %774 }
 0x257   : > { %v1384_v38 = vpop.eup %1383  ;;  %vm777_vm5 = vcmp.gt.f32.partialorder %v775_v37, 0.0 }
 0x258   : > { %v779_v39 = vsel %vm777_vm5, %v775_v37, 1.0  ;;  %v782_v40 = vmul.f32 %v1384_v38, %v768_v27 }
 0x259   : > { %1385 = vrcp.f32 %v779_v39  ;;  %v1060_v39 = vlaneseq }
 0x25a   : > { %1298 = vmatmul.msk.f32.vlgmr.msra.gmra.mxu2 %vm723_vm1, %v782_v40 }
 0x25b   : > { %v1061_v44 = vand.u32 127, %v1060_v39 }
 0x25d   : > { %vm1062_vm9 = vcmp.eq.s32.totalorder %v1061_v44, 14 }
 0x25e   : > { %v1315_v51 = vsel %vm1062_vm9, 1.0, %v1495_v50 }
 0x25f   : > { %v1386_v41 = vpop.eup %1385 }
 0x260   : > { %v783_v42 = vmul.f32 %v1386_v41, %v769_v30  ;;  %v1378_v41 = vld [vmem:[%s1911_s11] ss:$0 sm:$0xff] }
 0x262   : > { %1299 = vmatmul.msk.f32.gmra.mxu2 %vm723_vm1, %v783_v42 }
 0x2dd   : > { %v807_v48 = vpop.f32.mrf.mxu2 }
 0x2de   : > { %1300 = vmatmul.msk.f32.vlgmr.msra.gmra.mxu3 %vm691_vm0, %v807_v48 }
 0x2e5   : > { %v810_v49 = vpop.f32.mrf.mxu2 }
 0x2e6   : > { %1301 = vmatmul.msk.f32.gmra.mxu3 %vm691_vm0, %v810_v49 }
 0x361   : > { %v836_v56 = vpop.f32.mrf.mxu3 }
 0x362   : > { %v860_v57 = vadd.f32 %v859_v54, %v836_v56  ;;  %v1147_v56 = vld [vmem:[%s1916_s16 + $0x8] sm:$0x3] }
 0x364   : > { %v868_v58 = vadd.f32 %v1377_v55, %v860_v57  ;;  %v1146_v57 = vld [vmem:[%s1916_s16] sm:$0xff] }
 0x366   : > { %v870_v59 = vmax.f32 %v868_v58, 0.0  ;;  %v1089_v58 = vld [vmem:[%s1913_s13] sm:$0x1] }
 0x368   : > { %1304 = vmatmul.msk.f32.vlgmr.msrb.gmra.mxu2 %vm723_vm1, %v870_v59  ;;  %1313 = vmatmul.msk.f32.vlgmr.msra.gmra.mxu1 %vm723_vm1, %v870_v59 }
 0x369   : > { %v839_v61 = vpop.f32.mrf.mxu3 }
 0x36a   : > { %v863_v62 = vadd.f32 %v862_v60, %v839_v61  ;;  %v1116_v61 = vld [vmem:[%s1915_s15] sm:$0x1] }
 0x36c   : > { %v869_v63 = vadd.f32 %v1377_v55, %v863_v62  ;;  %v1113_v55 = vld [vmem:[%s1914_s14] sm:$0xff] }
 0x36e   : > { %v871_v0 = vmax.f32 %v869_v63, 0.0 }
 0x370   : > { %1305 = vmatmul.msk.f32.gmra.mxu2 %vm723_vm1, %v871_v0  ;;  %992 = vmatpush.msrb.mxu3 %v871_v0 }
 0x371   : > { %1314 = vmatmul.msk.f32.gmra.mxu1 %vm723_vm1, %v871_v0 }
 0x372   : > { %993 = vmatpush.msrb.mxu3 %v870_v59 }
 0x374   : > { %1108 = vmatpush.msra.mxu3 %v1088_v36 }
 0x3e5   : > { %v1047_v37 = vpop.f32.mrf.mxu1 }
 0x3eb   : > { %v903_v1 = vpop.f32.mrf.mxu2 }
 0x3ec   : > { %v909_v4 = vmax.f32 %v903_v1, 0.0  ;;  %v1148_v1 = vld [vmem:[%s1959_s23] sm:$0x1]  ;;  %s1439_s23 = sshra.s32 %s1206_s3, 4  ;;  %s1440_s23 = int_to_ptr.hbm [resolvable:$true] %s1439_s23 }
 0x3ed   : > { %s1441_s29 = scalar_lea.hbm %s1440_s23, 1  ;;  %p1446_p2 = scmp.lt.s32.totalorder %s1440_s23, %s1962_s21 }
 0x3ee   : > { %v1050_v42 = vpop.f32.mrf.mxu1  ;;  %p1442_p6 = scmp.ne.s32.totalorder %s1440_s23, %s1441_s29  ;;  %p1447_p3 = scmp.lt.s32.totalorder %s1445_s0, %s1441_s29 }
 0x3f0   : > { %p1443_p13 = pnand %p1442_p6, %p1654_p10  ;;  %p1448_p4 = por %p1447_p3, %p1446_p2 }
 0x3f2   : > { %p1444_p0 = pneg %p1443_p13 }
 0x3f3   : > { %v906_v2 = vpop.f32.mrf.mxu2 }
 0x3f4   : > { %v910_v3 = vmax.f32 %v906_v2, 0.0  ;;  %p1449_p5 = pnand %p1448_p4, %p1444_p0 }
 0x3f6   : > { %1306 = vmatpush.xpose.msk.msrb.mxu0 %vm911_vm6, %v910_v3 }
 0x3fa   : > { %1307 = vmatpush.xpose.msk.msrb.mxu0 %vm911_vm6, %v909_v4  ;;  %v1178_v4 = vld [vmem:[%s1960_s1] sm:$0x1] }
 0x3fd   : > { %1308 = vmatmul.msk.f32.vlgmr.msrb.gmra.mxu0 %vm911_vm6, %v874_v5 }
 0x3fe   : > { %1021 = vmatpush.msra.mxu0 %v878_v26 }
 0x400   : > { %1022 = vmatpush.msra.mxu0 %v877_v33 }
 0x402   : > { %1320 = vmatpush.msk.msrb.mxu0 %vm1153_vm11, %v1147_v56 }
 0x404   : > { %1172 = vmatpush.msrb.mxu0 %v1146_v57 }
 0x47a   : > { %v938_v6 = vpop.f32.mrf.mxu0 }
 0x47b   : > { %v941_v7 = vperm.slane %v938_v6, 0 }
 0x47d   : > { %v942_v8 = vsel %vm675_vm2, %v941_v7, -1e+30  ;;  %v943_v10 = vsel %vm676_vm3, %v941_v7, -1e+30 }
 0x47e   : > { %v944_v9 = vsel %vm723_vm1, %v942_v8, -inf  ;;  %v947_v11 = vsel %vm723_vm1, %v943_v10, -inf }
 0x47f   : > { %945 = vmax.xlane.f32.xlu2 %v944_v9  ;;  %v1184_v9 = vld [vmem:[#allocation2] sm:$0x1] }
 0x487   : > { %948 = vmax.xlane.f32.xlu2 %v947_v11 }
 0x4f2   : > { %v946_v13 = vpop.xlane.xlu2 %945 }
 0x4f3   : > { %v950_v14 = vsub.f32 %v942_v8, %v946_v13  ;;  %v1496_v8 = vmov 0  }
 0x4f4   : > { %1376 = vset.pattern.permute.xlu0 %v1496_v8 }
 0x4f5   : > { %v952_v15 = vmul.f32 1.442695, %v950_v14 }
 0x4f7   : > { %1387 = vpow2.f32 %v952_v15 }
 0x4fa   : > { %v949_v17 = vpop.xlane.xlu2 %948 }
 0x4fb   : > { %v951_v18 = vsub.f32 %v943_v10, %v949_v17 }
 0x4fd   : > { %v1388_v19 = vpop.eup %1387  ;;  %v954_v20 = vmul.f32 1.442695, %v951_v18 }
 0x4fe   : > { %v956_v21 = vsel %vm675_vm2, %v1388_v19, 0.0 }
 0x4ff   : > { %1389 = vpow2.f32 %v954_v20  ;;  %v958_v22 = vsel %vm723_vm1, %v956_v21, 0.0 }
 0x500   : > { %959 = vadd.xlane.f32.xlu0 %v958_v22 }
 0x505   : > { %v1390_v23 = vpop.eup %1389 }
 0x506   : > { %v957_v24 = vsel %vm676_vm3, %v1390_v23, 0.0 }
 0x507   : > { %v961_v25 = vsel %vm723_vm1, %v957_v24, 0.0 }
 0x508   : > { %962 = vadd.xlane.f32.xlu1 %v961_v25 }
 0x573   : > { %v960_v27 = vpop.xlane.xlu0 %959 }
 0x574   : > { %vm964_vm7 = vcmp.gt.f32.partialorder %v960_v27, 0.0 }
 0x575   : > { %v966_v12 = vsel %vm964_vm7, %v960_v27, 1.0 }
 0x576   : > { %1391 = vrcp.f32 %v966_v12 }
 0x57b   : > { %v963_v28 = vpop.xlane.xlu1 %962 }
 0x57c   : > { %v1392_v29 = vpop.eup %1391  ;;  %vm965_vm8 = vcmp.gt.f32.partialorder %v963_v28, 0.0 }
 0x57d   : > { %v967_v30 = vsel %vm965_vm8, %v963_v28, 1.0  ;;  %v970_v31 = vmul.f32 %v1392_v29, %v956_v21 }
 0x57e   : > { %1393 = vrcp.f32 %v967_v30 }
 0x57f   : > { %1309 = vmatmul.msk.f32.vlgmr.msrb.gmra.mxu3 %vm723_vm1, %v970_v31 }
 0x584   : > { %v1394_v16 = vpop.eup %1393 }
 0x585   : > { %v971_v32 = vmul.f32 %v1394_v16, %v957_v24 }
 0x587   : > { %1310 = vmatmul.msk.f32.gmra.mxu3 %vm723_vm1, %v971_v32 }
 0x602   : > { %v995_v34 = vpop.f32.mrf.mxu3 }
 0x603   : > { %1311 = vmatmul.msk.f32.vlgmr.msra.gmra.mxu0 %vm723_vm1, %v995_v34 }
 0x60a   : > { %v998_v35 = vpop.f32.mrf.mxu3 }
 0x60b   : > { %1312 = vmatmul.msk.f32.gmra.mxu0 %vm723_vm1, %v998_v35 }
 0x680   : > { %v1024_v38 = vpop.f32.mrf.mxu0 }
 0x681   : > { %v1048_v40 = vadd.f32 %v1047_v37, %v1024_v38 }
 0x683   : > { %v1056_v46 = vadd.f32 %v1378_v41, %v1048_v40 }
 0x685   : > { %v1058_v49 = vmax.f32 %v1056_v46, 0.0 }
 0x688   : > { %v1027_v43 = vpop.f32.mrf.mxu0 }
 0x689   : > { %v1051_v45 = vadd.f32 %v1050_v42, %v1027_v43 }
 0x68b   : > { %v1057_v47 = vadd.f32 %v1378_v41, %v1051_v45 }
 0x68d   : > { %v1059_v48 = vmax.f32 %v1057_v47, 0.0 }
 0x68f   : > { %1082 = vmatpush.msra.mxu2 %v1059_v48 }
 0x691   : > { %1083 = vmatpush.msra.mxu2 %v1058_v49 }
 0x692   : > { %1316 = vmatmul.msk.f32.vlgmr.msra.gmra.mxu2 %vm723_vm1, %v1315_v51 }
 0x693   : > { %1318 = vmatpush.msk.msrb.mxu2 %vm1121_vm10, %v1115_v52 }
 0x695   : > { %1139 = vmatpush.msrb.mxu2 %v1114_v53 }
 0x697   : > { %1140 = vmatpush.msrb.mxu2 %v1113_v55 }
 0x715   : > { %v1085_v54 = vpop.f32.mrf.mxu2 }
 0x716   : > { %1317 = vmatmul.msk.f32.vlgmr.msra.gmra.mxu3 %vm911_vm6, %v1085_v54 }
 0x799   : > { %v1110_v59 = vpop.f32.mrf.mxu3 }
 0x79a   : > { %v1111_v60 = vadd.f32 %v1110_v59, %v1089_v58 }
 0x79c   : > { %1319 = vmatmul.msk.f32.vlgmr.msrb.gmra.mxu2 %vm1117_vm12, %v1111_v60 }
 0x81f   : > { %v1142_v62 = vpop.f32.mrf.mxu2 }
 0x820   : > { %v1143_v63 = vadd.f32 %v1142_v62, %v1116_v61 }
 0x822   : > { %v1145_v0 = vmax.f32 %v1143_v63, 0.0 }
 0x824   : > { %1321 = vmatmul.msk.f32.vlgmr.msrb.gmra.mxu0 %vm1149_vm13, %v1145_v0 }
 0x8a1   : > { %v1174_v2 = vpop.f32.mrf.mxu0 }
 0x8a2   : > { %v1175_v3 = vadd.f32 %v1174_v2, %v1148_v1 }
 0x8a4   : > { %v1177_v5 = vmax.f32 %v1175_v3, 0.0 }
 0x8a6   : > { %v1179_v6 = vmul.f32 %v1178_v4, %v1177_v5 }
 0x8a8   : > { %v1181_v7 = vsel %vm1180_vm14, %v1179_v6, 0.0 }
 0x8a9   : > { %1182 = vadd.xlane.f32.xlu2 %v1181_v7 }
 0x91c   : > { %v1183_v10 = vpop.xlane.xlu2 %1182 }
 0x91d   : > { %v1185_v11 = vadd.f32 %v1184_v9, %v1183_v10 }
 0x91f   : > { %1188 = vperm.xlu0 %1376, %v1185_v11  }
 0x991   : > { %v1189_v13 = vpop.permute.xlu0 %1188 }
 0x992   : > { %1191 = vst [vmem:[%s665_s2] sm:$0x1] %v1189_v13 }
 0x993   : > { %1452 = shalt.err (!%p1449_p5)
}
 0x994   : > { %1328 = dma.vmem_to_hbm [thread:$0]  (%p1654_p10), %s1204_s20, 16, %s1206_s3, %s1193_s18  }
 0x995 PF: > { %s1963_s28 = sld [smem:[#allocation9_spill]]  ;;  %p1339_p7 = scmp.ge.s32.totalorder %s1491_s25, 2 }
 0x997   : > { %p1335_p8 = pnand %p1339_p7, %p1658_p11 }
 0x999   : > { %p1336_p9 = pneg %p1335_p8 }
 0x99b   : > { %s1217_s2 = sand.u32 1, %s1963_s28  }
 0x99c   : > { %s1218_s22 = scalar_lea.sflag [#allocation5], %s1217_s2 }
 0x99d   : > { %1474 = dma.done.wait (%p1336_p9), %s1218_s22, 16  }
 0x99e   : > { %1476 = vsyncadd (%p1336_p9), %s1218_s22, 4294967280  ;;  %s1965_s25 = sld [smem:[#allocation11_spill]]  ;;  %s1968_s23 = smov %s1483_s24 }
 0x99f   : > { %s1966_s29 = sld [smem:[#allocation10_spill]] }
 0x9a0   : > { %s1967_s2 = sld [smem:[#allocation12_spill]] }
 0x9a4   : > { %p35_p1 = scmp.ge.s32.totalorder %s1965_s25, 6  }
 0x9a5   : > { %s1969_s24 = smov %s1966_s29 }
 0x9a6   :  { %37 = sbr.rel (!%p35_p1) target bundleno = 14 (0xe), region = 148 }
 0x9ab   :  { %1223 = vsyncpa [#allocation4], 1 }
 0x9ac   :  { %1225 = vsyncpa [#allocation4 + $0x1], 1 }
 0x9ad   :  { %1226 = vsyncpa [#allocation5], 1 }
 0x9ae   :  { %1228 = vsyncpa [#allocation5 + $0x1], 1 }

</bundles_post_ra>
